<compile_context>
chip_gen: v7x
topology: tpu7x:2x2x1
jax: 0.10.0
libtpu: 0.0.40
codegen_flags: <defaults>
</compile_context>

<pallas_src>
import functools

import numpy as np

import jax
import jax.numpy as jnp
from jax import lax
from jax.experimental import pallas as pl
from jax.experimental.pallas import tpu as pltpu


def _skipconv_kernel(p_ref, w_ref, b_ref, o_ref):
    # p_ref: (1, K, tm)     im2col patches^T tile (K = 16*Cin), compute dtype
    # w_ref: (2*Cout, K)    rows [0:Cout] = conv weights, rows [Cout:] = pool matrix
    # b_ref: (Cout, 1)      f32 bias
    # o_ref: (1, Cout, tm)  f32 output tile
    cout = o_ref.shape[1]
    # One fused MXU matmul: conv (K = 16*Cin contraction) and avg-pool together,
    # accumulated in f32.
    acc = jnp.dot(w_ref[...], p_ref[0], preferred_element_type=jnp.float32)
    conv = acc[:cout] + b_ref[...]      # (Cout, tm) + (Cout, 1) lane-broadcast
    pooled = acc[cout:]                 # (Cout, tm)  f32-accumulated 2x2 mean
    o_ref[0] = jnp.maximum(conv + pooled, 0.0).astype(o_ref.dtype)


def _pick_tile(m_img):
    # Lane-axis tile: a multiple of 128 when possible, else the full extent.
    for t in (2048, 1024, 512, 256, 128):
        if m_img % t == 0:
            return t
    return m_img


@functools.partial(jax.jit, static_argnames=("compute_dtype",))
def skip_conv(x_nchw, weight_oihw, bias, *, compute_dtype=jnp.bfloat16):
    """x: (N, Cin, H, W) f32; weight: (Cout, Cin, 4, 4); bias: (Cout,).

    Returns relu(avg_pool2d(x, 2) + conv2d(x, weight, bias, stride=2, pad=1)),
    shape (N, Cout, H//2, W//2), NCHW.
    """
    n, cin, h, w = x_nchw.shape
    cout = weight_oihw.shape[0]
    assert cin == cout, "SkipConv residual add requires in_channels == out_channels"
    assert weight_oihw.shape[1:] == (cin, 4, 4)
    assert h % 2 == 0 and w % 2 == 0
    ho, wo = h // 2, w // 2
    m_img = ho * wo
    k = 16 * cin

    # ---- one fused im2col gather (feature order is channel-major: ci*16 + kh*4 + kw)
    patches = lax.conv_general_dilated_patches(
        x_nchw.astype(compute_dtype),
        filter_shape=(4, 4),
        window_strides=(2, 2),
        padding=((1, 1), (1, 1)),
        dimension_numbers=("NCHW", "OIHW", "NCHW"),
    )                                                   # (N, 16*Cin, Ho, Wo)
    patches = patches.reshape(n, k, m_img)              # M = Ho*Wo rides lanes

    # ---- conv weights flattened to match the patch feature ordering
    w_flat = np.asarray(weight_oihw, dtype=np.float32).reshape(cout, k) \
        if isinstance(weight_oihw, np.ndarray) else weight_oihw.reshape(cout, k)

    # ---- pool matrix: AvgPool2d(2,2) == 0.25 * conv taps (kh,kw) in {1,2}^2
    tap_mask = np.zeros((16,), np.float32)
    tap_mask[[5, 6, 9, 10]] = 0.25
    pool_flat = (np.eye(cout, cin, dtype=np.float32)[:, :, None]
                 * tap_mask[None, None, :]).reshape(cout, k)
    w_all = jnp.concatenate(
        [jnp.asarray(w_flat, jnp.float32), jnp.asarray(pool_flat)], axis=0
    ).astype(compute_dtype)                              # (2*Cout, K)

    b2 = bias.reshape(cout, 1).astype(jnp.float32)       # (Cout, 1)

    tm = _pick_tile(m_img)
    grid = (n, m_img // tm)

    out = pl.pallas_call(
        _skipconv_kernel,
        out_shape=jax.ShapeDtypeStruct((n, cout, m_img), jnp.float32),
        grid=grid,
        in_specs=[
            pl.BlockSpec((1, k, tm), lambda i, j: (i, 0, j)),
            pl.BlockSpec((2 * cout, k), lambda i, j: (0, 0)),
            pl.BlockSpec((cout, 1), lambda i, j: (0, 0)),
        ],
        out_specs=pl.BlockSpec((1, cout, tm), lambda i, j: (i, 0, j)),
        compiler_params=pltpu.CompilerParams(
            dimension_semantics=("parallel", "parallel")),
    )(patches, w_all, b2)

    return out.reshape(n, cout, ho, wo).astype(x_nchw.dtype)


def _reference_f32(x, weight, bias):
    conv = lax.conv_general_dilated(
        x, weight,
        window_strides=(2, 2), padding=((1, 1), (1, 1)),
        dimension_numbers=("NCHW", "OIHW", "NCHW"),
    ) + bias[None, :, None, None]
    n, c, h, w = x.shape
    pooled = x.reshape(n, c, h // 2, 2, w // 2, 2).mean(axis=(3, 5))
    return jnp.maximum(conv + pooled, 0.0)


if __name__ == "__main__":
    key = jax.random.PRNGKey(0)
    kx, kwt, kb = jax.random.split(key, 3)

    N, C, H, W = 2, 4, 16, 16          # in_channels == out_channels == 4
    x = jax.random.normal(kx, (N, C, H, W), dtype=jnp.float32)

    # Deterministic synthetic Conv2d(C, C, 4, 2, 1) params (PyTorch fan-in scale).
    fan_in = C * 4 * 4
    bound = 1.0 / (fan_in ** 0.5)
    weight = jax.random.uniform(kwt, (C, C, 4, 4), jnp.float32, -bound, bound)
    bias = jax.random.uniform(kb, (C,), jnp.float32, -bound, bound)

    out = skip_conv(x, weight, bias)             # bf16 matmul operands, f32 accum
    out = jax.block_until_ready(out)
    assert out.shape == (N, C, H // 2, W // 2), out.shape

    # Tight check vs a reference with the same mixed-precision policy
    # (x and conv weights rounded to bf16, all arithmetic / accumulation in f32).
    xb = x.astype(jnp.bfloat16).astype(jnp.float32)
    wb = weight.astype(jnp.bfloat16).astype(jnp.float32)
    ref_matched = _reference_f32(xb, wb, bias)
    err_tight = float(jnp.max(jnp.abs(out - ref_matched)))
    assert jnp.allclose(out, ref_matched, atol=1e-3, rtol=1e-3), err_tight

    # Loose sanity check vs pure-f32 PyTorch semantics (bf16 input rounding only).
    ref = _reference_f32(x, weight, bias)
    err_loose = float(jnp.max(jnp.abs(out - ref)))
    assert jnp.allclose(out, ref, atol=7e-2, rtol=7e-2), err_loose

    print("KERNEL_OK")
</pallas_src>

<mosaic_0001>
module attributes {stable_mosaic.version = 11 : i64} {
  func.func @_skipconv_kernel(%arg0: i32, %arg1: i32, %arg2: memref<1x64x64xbf16, #tpu.memory_space<vmem>>, %arg3: memref<8x64xbf16, #tpu.memory_space<vmem>>, %arg4: memref<4x1xf32, #tpu.memory_space<vmem>>, %arg5: memref<1x4x64xf32, #tpu.memory_space<vmem>>) attributes {dimension_semantics = [#tpu.dimension_semantics<parallel>, #tpu.dimension_semantics<parallel>], iteration_bounds = array<i64: 2, 1>, scalar_prefetch = 0 : i64, scratch_operands = 0 : i64, tpu.core_type = #tpu.core_type<tc>, window_params = [{transform_indices = @transform_0, window_bounds = array<i64: 1, 64, 64>}, {pipeline_mode = #tpu.pipeline_mode<synchronous>, transform_indices = @transform_1, window_bounds = array<i64: 8, 64>}, {pipeline_mode = #tpu.pipeline_mode<synchronous>, transform_indices = @transform_2, window_bounds = array<i64: 4, 1>}, {transform_indices = @transform_3, window_bounds = array<i64: 1, 4, 64>}]} {
    %c0 = arith.constant 0 : index
    %c0_0 = arith.constant 0 : index
    %0 = vector.load %arg3[%c0, %c0_0] : memref<8x64xbf16, #tpu.memory_space<vmem>>, vector<8x64xbf16>
    %c0_1 = arith.constant 0 : index
    %c0_2 = arith.constant 0 : index
    %c0_3 = arith.constant 0 : index
    %1 = vector.load %arg2[%c0_1, %c0_2, %c0_3] : memref<1x64x64xbf16, #tpu.memory_space<vmem>>, vector<1x64x64xbf16>
    %2 = vector.shape_cast %1 : vector<1x64x64xbf16> to vector<64x64xbf16>
    %cst = arith.constant dense<0.000000e+00> : vector<8x64xf32>
    %3 = tpu.matmul %0, %2, %cst {dimension_numbers = #tpu.dot_dimension_numbers<[1], [0], [0], [1], [0, 0, 1, 1], [], []>} : vector<8x64xbf16>, vector<64x64xbf16>, vector<8x64xf32> -> vector<8x64xf32>
    %4 = vector.extract_strided_slice %3 {offsets = [0, 0], sizes = [4, 64], strides = [1, 1]} : vector<8x64xf32> to vector<4x64xf32>
    %c0_4 = arith.constant 0 : index
    %c0_5 = arith.constant 0 : index
    %5 = vector.load %arg4[%c0_4, %c0_5] : memref<4x1xf32, #tpu.memory_space<vmem>>, vector<4x1xf32>
    %6 = vector.broadcast %5 : vector<4x1xf32> to vector<4x64xf32>
    %7 = arith.addf %4, %6 : vector<4x64xf32>
    %8 = vector.extract_strided_slice %3 {offsets = [4, 0], sizes = [4, 64], strides = [1, 1]} : vector<8x64xf32> to vector<4x64xf32>
    %9 = arith.addf %7, %8 : vector<4x64xf32>
    %cst_6 = arith.constant 0.000000e+00 : f32
    %10 = vector.broadcast %cst_6 : f32 to vector<4x64xf32>
    %11 = arith.maximumf %9, %10 : vector<4x64xf32>
    %c0_7 = arith.constant 0 : index
    %c0_8 = arith.constant 0 : index
    %c0_9 = arith.constant 0 : index
    %12 = vector.load %arg5[%c0_7, %c0_8, %c0_9] : memref<1x4x64xf32, #tpu.memory_space<vmem>>, vector<1x4x64xf32>
    %13 = vector.shape_cast %12 : vector<1x4x64xf32> to vector<4x64xf32>
    %14 = vector.shape_cast %11 : vector<4x64xf32> to vector<1x4x64xf32>
    tpu.vector_store %arg5[%c0_7, %c0_8, %c0_9], %14 {strides = array<i32>} : memref<1x4x64xf32, #tpu.memory_space<vmem>>, vector<1x4x64xf32>,
    return
  }
  func.func @transform_0(%arg0: i32, %arg1: i32) -> (i32, i32, i32) {
    %c0_i32 = arith.constant 0 : i32
    %c0_i32_0 = arith.constant 0 : i32
    return %arg0, %c0_i32, %arg1 : i32, i32, i32
  }
  func.func @transform_1(%arg0: i32, %arg1: i32) -> (i32, i32) {
    %c0_i32 = arith.constant 0 : i32
    %c0_i32_0 = arith.constant 0 : i32
    %c0_i32_1 = arith.constant 0 : i32
    return %c0_i32, %c0_i32_0 : i32, i32
  }
  func.func @transform_2(%arg0: i32, %arg1: i32) -> (i32, i32) {
    %c0_i32 = arith.constant 0 : i32
    %c0_i32_0 = arith.constant 0 : i32
    %c0_i32_1 = arith.constant 0 : i32
    return %c0_i32, %c0_i32_0 : i32, i32
  }
  func.func @transform_3(%arg0: i32, %arg1: i32) -> (i32, i32, i32) {
    %c0_i32 = arith.constant 0 : i32
    %c0_i32_0 = arith.constant 0 : i32
    return %arg0, %c0_i32, %arg1 : i32, i32, i32
  }
}

</mosaic_0001>

<bundles_post_ra>
// kernel: skip_conv.1
= control target key start
LH: loop header
LB: loop body
LE: loop exit
PB: predicated region body
PF: predicated region fallthrough
CT: control target
= control target key end

     0   :  { %s481_s12 = smov 0   ;;  %s483_s13 = smov 0   ;;  %s524_s0 = inlined_call_operand.vmem [shape: bf16[2,64,64], index: 0, kind: input, shape index: {}]   ;;  %s525_s1 = inlined_call_operand.vmem [shape: bf16[8,64], index: 1, kind: input, shape index: {}]   ;;  %s526_s2 = inlined_call_operand.vmem [shape: f32[4,1], index: 2, kind: input, shape index: {}]   ;;  %s527_s3 = inlined_call_operand.vmem [shape: f32[2,4,64], index: 3, kind: output, shape index: {}]  }
   0x1   :  { %s485_s14 = smov 0  }
   0x2 LB: > { %s25_s15 = sadd.s32 1, %s452_s13  ;;  %p373_p0 = scmp.ge.s32.totalorder %s456_s14, 1  ;;  %s456_s14 = sphi %s485_s14, %s13_s14   ;;  %s452_s13 = sphi %s483_s13, %s529_s13   ;;  %s448_s12 = sphi %s481_s12, %s528_s12  }
   0x3   : > { %p27_p1 = scmp.ge.s32.totalorder %s25_s15, 2  ;;  %p156_p2 = scmp.lt.s32.totalorder %s456_s14, 3 }
   0x5   : > { %s531_s15 = smov (%p27_p1, %s25_s15), 0  ;;  %p157_p3 = pnand %p373_p0, %p156_p2 }
   0x6   : > { %p185_p4 = scmp.lt.s32.totalorder (!%p157_p3), %s448_s12, 1  ;;  %v458_v0 = vmov (!%p157_p3), 0.0   ;;  %vm459_vm0 = vmmov (!%p157_p3), 0   ;;  %v278_v1 = vld [vmem:[%s526_s2] sm:$0xf] (!%p157_p3)  ;;  %v460_v2 = vmov (!%p157_p3), 0  }
   0x7   : > { %160 = sbr.rel (%p157_p3) target bundleno = 252 (0xfc), region = 32  ;;  %390 = vmatprep.subr.bf16.mxu0 (!%p157_p3), %v458_v0  ;;  %398 = vmatprep.mubr.msk.bf16.mxu0 (!%p157_p3), %vm459_vm0, %v458_v0  ;;  %v201_v7 = vld [vmem:[%s525_s1] sm:$0xf] (!%p157_p3)  ;;  %vm234_vm1 = vcmask (!%p157_p3), 523264   ;;  %vm290_vm2 = vcmask (!%p157_p3), 519168  }
   0x8   : > { %429 = vset.pattern.permute.xlu0 (!%p157_p3), %v460_v2 }
   0x9   : > { %281 = vperm.xlu0 (!%p157_p3), %429, %v278_v1  }
   0xe   : > { %s533_s12 = smov (!%p185_p4, %s448_s12), 1 }
   0xf   : > { %s384_s18 = sshll.u32 %s533_s12, 5  ;;  %s376_s24 = sshll.u32 %s533_s12, 2 }
  0x10   : > { %s192_s21 = scalar_lea.vmem %s524_s0, %s384_s18  ;;  %s199_s27 = scalar_lea.vmem %s527_s3, %s376_s24 }
  0x11   : > { %v430_v3 = vld [vmem:[%s192_s21] sm:$0xff]   ;;  %v431_v4 = vld [vmem:[%s192_s21 + $0x8] sm:$0xff]   ;;  %v432_v5 = vld [vmem:[%s192_s21 + $0x10] sm:$0xff]  }
  0x12   : > { %391 = vmatpush3.bf16.msra.mxu0 %v430_v3  ;;  %v433_v6 = vld [vmem:[%s192_s21 + $0x18] sm:$0xff]  }
  0x13   : > { %392 = vmatprep.subr.bf16.mxu0 %v458_v0 }
  0x16   : > { %393 = vmatpush3.bf16.msra.mxu0 %v431_v4 }
  0x17   : > { %394 = vmatprep.subr.bf16.mxu0 %v458_v0 }
  0x1a   : > { %395 = vmatpush3.bf16.msra.mxu0 %v432_v5 }
  0x1b   : > { %396 = vmatprep.subr.bf16.mxu0 %v458_v0 }
  0x1e   : > { %397 = vmatpush3.bf16.msra.mxu0 %v433_v6 }
  0x21   : > { %399 = vmatmul.mubr.msk.bf16.vlgmr.msra.gmra.mrb[0].mxu0 %vm234_vm1, %v201_v7 }
  0x88   : > { %v282_v8 = vpop.permute.xlu0 %281 }
  0xf4   : > { %v272_v9 = vpop.f32.mrb[0].mxu0 }
  0xf5   : > { %v284_v10 = vadd.f32 %v282_v8, %v272_v9  ;;  %v286_v11 = vrot.slane %v272_v9, 4  ;;  %v400_v12 = vpop.f32.mrb[1].mxu0 }
  0xf6   : > { %v275_v13 = vpop.f32.mrb[2].mxu0 }
  0xf7   : > { %v288_v14 = vadd.f32 %v286_v11, %v284_v10  ;;  %v401_v15 = vpop.f32.mrb[3].mxu0 }
  0xf9   : > { %v289_v16 = vmax.f32 %v288_v14, 0.0 }
  0xfb   : > { %291 = vst.msk [vmem:[%s199_s27] sm:$0xf] %vm290_vm2, %v289_v16 }
  0xfc PF: > { %s13_s14 = sadd.s32 1, %s456_s14   ;;  %s528_s12 = smov %s452_s13 }
  0xfd   : > { %p10_p5 = scmp.ge.s32.totalorder %s13_s14, 4   ;;  %s529_s13 = smov %s531_s15 }
  0xff   :  { %12 = sbr.rel (!%p10_p5) target bundleno = 2 (0x2), region = 62 }

</bundles_post_ra>
